<compile_context>
chip_gen: v6e
topology: v6e:2x2x1
jax: 0.10.0
libtpu: 0.0.40
codegen_flags: <defaults>
</compile_context>

<pallas_src>
import math

import jax
import jax.numpy as jnp
from jax.experimental import pallas as pl
from jax.experimental.pallas import tpu as pltpu

_LANE = 128
_MAX_ROW_BLOCK = 1024          # row tiling threshold (VMEM headroom on v7x)
_TARGET_BLOCK_ELEMS = 1 << 19  # ~2 MiB of f32 per input block
_MAX_FOLD_CHUNKS = 32          # unroll bound for the per-step lane fold


def _num_tensorcores() -> int:
    """Best-effort TensorCore count (v7x has 2; v5e/v6e have 1)."""
    try:
        info = pltpu.get_tpu_info()
    except Exception:
        return 1
    for name in ("num_cores", "core_count", "num_tensorcores",
                 "tensorcore_count", "cores_per_chip"):
        v = getattr(info, name, None)
        if isinstance(v, int) and v > 0:
            return v
    return 1


def _make_dice_kernel(dr, block_d, steps, use_fold, num_chunks, need_mask):
    """Per-row sum(x*t), sum(x), sum(t) accumulated over the tiled D axis."""

    def kernel(x_ref, t_ref, out_ref, inter_acc, x_acc, t_acc):
        s = pl.program_id(1)   # column split (megacore)
        j = pl.program_id(2)   # reduction step within this split

        @pl.when(j == 0)
        def _init():
            inter_acc[...] = jnp.zeros_like(inter_acc)
            x_acc[...] = jnp.zeros_like(x_acc)
            t_acc[...] = jnp.zeros_like(t_acc)

        # Native dtype streamed from HBM; upcast per block (no wrapper passes).
        x = x_ref[...].astype(jnp.float32)
        t = t_ref[...].astype(jnp.float32)

        if need_mask:
            # Ragged tail: zero lanes past the true reduction width (exact).
            col0 = (s * steps + j) * block_d
            col = col0 + jax.lax.broadcasted_iota(jnp.int32, x.shape, 1)
            valid = col < dr
            x = jnp.where(valid, x, 0.0)
            t = jnp.where(valid, t, 0.0)

        xt = x * t

        if use_fold:
            # Pure-VPU fold of the block into 128 lanes; the XLU cross-lane
            # reduce is deferred to the finalize step below.
            def contrib(v):
                acc = v[:, :_LANE]
                for i in range(1, num_chunks):
                    acc = acc + v[:, i * _LANE:(i + 1) * _LANE]
                return acc
        else:
            def contrib(v):
                return jnp.sum(v, axis=1, keepdims=True)

        inter_acc[...] += contrib(xt)
        x_acc[...] += contrib(x)
        t_acc[...] += contrib(t)

        @pl.when(j == steps - 1)
        def _finalize():
            out_ref[:, 0:1] = jnp.sum(inter_acc[...], axis=1, keepdims=True)
            out_ref[:, 1:2] = jnp.sum(x_acc[...], axis=1, keepdims=True)
            out_ref[:, 2:3] = jnp.sum(t_acc[...], axis=1, keepdims=True)

    return kernel


def binary_dice_loss(inputs: jax.Array, targets: jax.Array) -> jax.Array:
    """Matches BinaryDiceLoss.forward: loss = 1 - mean_n dice_n, smooth = 1."""
    n = targets.shape[0]
    x = inputs.reshape(n, -1)    # native dtypes: no standalone cast passes
    t = targets.reshape(n, -1)
    d = x.shape[1]

    # Sublane repack (free reshape) so vreg sublanes carry real data.
    r = 1
    if n % 8 != 0:
        cand = 8 // math.gcd(n, 8)
        while cand > 1 and d % cand != 0:
            cand //= 2
        r = cand
    rows, dr = n * r, d // r
    x2 = x.reshape(rows, dr)
    t2 = t.reshape(rows, dr)

    # Row tiling only when the row dimension is large (keeps depth-2 pipelining
    # within v7x's smaller VMEM).
    if rows <= _MAX_ROW_BLOCK:
        row_block, row_tiles = rows, 1
    else:
        row_block, row_tiles = _MAX_ROW_BLOCK, pl.cdiv(rows, _MAX_ROW_BLOCK)

    # Lane tiling: ~1-2 MiB f32-equivalent blocks, lane-aligned.
    if dr <= _LANE:
        block_d = dr
    else:
        bd = max(_LANE, (_TARGET_BLOCK_ELEMS // row_block) // _LANE * _LANE)
        block_d = min(bd, pl.cdiv(dr, _LANE) * _LANE)
    steps_total = pl.cdiv(dr, block_d)
    need_mask = steps_total * block_d != dr

    use_fold = (block_d % _LANE == 0) and (block_d // _LANE <= _MAX_FOLD_CHUNKS)
    num_chunks = block_d // _LANE if use_fold else 1
    acc_w = _LANE if use_fold else 1

    # 2-way column split only on multi-TensorCore chips; never adds dead blocks.
    cores = _num_tensorcores()
    if cores >= 2 and steps_total >= 2 and steps_total % 2 == 0 and rows % 8 == 0:
        num_splits = 2
    else:
        num_splits = 1
    steps = steps_total // num_splits

    kernel = _make_dice_kernel(dr, block_d, steps, use_fold, num_chunks, need_mask)

    out_rows = num_splits * row_tiles * row_block
    elem_bytes = x2.dtype.itemsize + t2.dtype.itemsize
    cost = pl.CostEstimate(
        flops=4 * rows * dr,
        transcendentals=0,
        bytes_accessed=rows * dr * elem_bytes + out_rows * 3 * 4,
    )

    def in_map(rt, s, j):
        return (rt, s * steps + j)

    def out_map(rt, s, j):
        return (s * row_tiles + rt, 0)

    sums = pl.pallas_call(
        kernel,
        out_shape=jax.ShapeDtypeStruct((out_rows, 3), jnp.float32),
        grid_spec=pltpu.PrefetchScalarGridSpec(
            num_scalar_prefetch=0,
            grid=(row_tiles, num_splits, steps),
            in_specs=[
                pl.BlockSpec((row_block, block_d), in_map),   # x, native dtype
                pl.BlockSpec((row_block, block_d), in_map),   # t, native dtype
            ],
            out_specs=pl.BlockSpec((row_block, 3), out_map),
            scratch_shapes=[pltpu.VMEM((row_block, acc_w), jnp.float32)] * 3,
        ),
        compiler_params=pltpu.CompilerParams(
            dimension_semantics=("parallel", "parallel", "arbitrary"),
            vmem_limit_bytes=32 * 1024 * 1024,
        ),
        cost_estimate=cost,
    )(x2, t2)

    # Tiny finalize in the wrapper: fold splits / repacked rows back to samples.
    sums = sums.reshape(num_splits, row_tiles * row_block, 3)[:, :rows, :]
    sums = sums.sum(axis=0).reshape(n, r, 3).sum(axis=1)       # (n, 3)
    inter, xs, ts = sums[:, 0], sums[:, 1], sums[:, 2]

    smooth = 1.0
    dice = (2.0 * inter + smooth) / (xs + ts + smooth)
    return 1.0 - jnp.sum(dice) / n


def _reference(inputs, targets):
    n = targets.shape[0]
    smooth = 1.0
    xf = inputs.reshape(n, -1).astype(jnp.float32)
    tf = targets.reshape(n, -1).astype(jnp.float32)
    inter = jnp.sum(xf * tf, axis=1)
    dice = (2.0 * inter + smooth) / (jnp.sum(xf, axis=1) + jnp.sum(tf, axis=1) + smooth)
    return 1.0 - jnp.sum(dice) / n


if __name__ == "__main__":
    key = jax.random.PRNGKey(0)
    k1, k2 = jax.random.split(key)

    # Small NCHW shapes: batch=2, channels=4, spatial=16x16
    x = jax.nn.sigmoid(jax.random.normal(k1, (2, 4, 16, 16), dtype=jnp.float32))
    t = (jax.random.uniform(k2, (2, 4, 16, 16)) > 0.5).astype(jnp.float32)

    loss = binary_dice_loss(x, t)
    jax.block_until_ready(loss)

    ref = _reference(x, t)
    assert jnp.allclose(loss, ref, atol=1e-5, rtol=1e-5), (loss, ref)

    print("KERNEL_OK")
</pallas_src>

<mosaic_0001>
module attributes {stable_mosaic.version = 11 : i64} {
  func.func @kernel(%arg0: i32, %arg1: i32, %arg2: i32, %arg3: memref<8x256xf32, #tpu.memory_space<vmem>>, %arg4: memref<8x256xf32, #tpu.memory_space<vmem>>, %arg5: memref<8x3xf32, #tpu.memory_space<vmem>>, %arg6: memref<8x128xf32, #tpu.memory_space<vmem>>, %arg7: memref<8x128xf32, #tpu.memory_space<vmem>>, %arg8: memref<8x128xf32, #tpu.memory_space<vmem>>) attributes {dimension_semantics = [#tpu.dimension_semantics<parallel>, #tpu.dimension_semantics<parallel>, #tpu.dimension_semantics<arbitrary>], iteration_bounds = array<i64: 1, 1, 1>, scalar_prefetch = 0 : i64, scratch_operands = 3 : i64, tpu.core_type = #tpu.core_type<tc>, window_params = [{transform_indices = @transform_0, window_bounds = array<i64: 8, 256>}, {transform_indices = @transform_1, window_bounds = array<i64: 8, 256>}, {transform_indices = @transform_2, window_bounds = array<i64: 8, 3>}]} {
    %c0_i32 = arith.constant 0 : i32
    %0 = arith.cmpi eq, %arg2, %c0_i32 : i32
    %1 = arith.extui %0 : i1 to i32
    %c0_i32_0 = arith.constant 0 : i32
    %2 = arith.cmpi ne, %1, %c0_i32_0 : i32
    scf.if %2 {
      %cst = arith.constant 0.000000e+00 : f32
      %27 = vector.broadcast %cst : f32 to vector<8x128xf32>
      %c0_18 = arith.constant 0 : index
      %c0_19 = arith.constant 0 : index
      %28 = vector.load %arg6[%c0_18, %c0_19] : memref<8x128xf32, #tpu.memory_space<vmem>>, vector<8x128xf32>
      tpu.vector_store %arg6[%c0_18, %c0_19], %27 {strides = array<i32>} : memref<8x128xf32, #tpu.memory_space<vmem>>, vector<8x128xf32>,
      %cst_20 = arith.constant 0.000000e+00 : f32
      %29 = vector.broadcast %cst_20 : f32 to vector<8x128xf32>
      %c0_21 = arith.constant 0 : index
      %c0_22 = arith.constant 0 : index
      %30 = vector.load %arg7[%c0_21, %c0_22] : memref<8x128xf32, #tpu.memory_space<vmem>>, vector<8x128xf32>
      tpu.vector_store %arg7[%c0_21, %c0_22], %29 {strides = array<i32>} : memref<8x128xf32, #tpu.memory_space<vmem>>, vector<8x128xf32>,
      %cst_23 = arith.constant 0.000000e+00 : f32
      %31 = vector.broadcast %cst_23 : f32 to vector<8x128xf32>
      %c0_24 = arith.constant 0 : index
      %c0_25 = arith.constant 0 : index
      %32 = vector.load %arg8[%c0_24, %c0_25] : memref<8x128xf32, #tpu.memory_space<vmem>>, vector<8x128xf32>
      tpu.vector_store %arg8[%c0_24, %c0_25], %31 {strides = array<i32>} : memref<8x128xf32, #tpu.memory_space<vmem>>, vector<8x128xf32>,
    } else {
    }
    %c0 = arith.constant 0 : index
    %c0_1 = arith.constant 0 : index
    %3 = vector.load %arg3[%c0, %c0_1] : memref<8x256xf32, #tpu.memory_space<vmem>>, vector<8x256xf32>
    %c0_2 = arith.constant 0 : index
    %c0_3 = arith.constant 0 : index
    %4 = vector.load %arg4[%c0_2, %c0_3] : memref<8x256xf32, #tpu.memory_space<vmem>>, vector<8x256xf32>
    %5 = arith.mulf %3, %4 : vector<8x256xf32>
    %c0_4 = arith.constant 0 : index
    %c0_5 = arith.constant 0 : index
    %6 = vector.load %arg6[%c0_4, %c0_5] : memref<8x128xf32, #tpu.memory_space<vmem>>, vector<8x128xf32>
    %7 = vector.extract_strided_slice %5 {offsets = [0, 0], sizes = [8, 128], strides = [1, 1]} : vector<8x256xf32> to vector<8x128xf32>
    %8 = vector.extract_strided_slice %5 {offsets = [0, 128], sizes = [8, 128], strides = [1, 1]} : vector<8x256xf32> to vector<8x128xf32>
    %9 = arith.addf %7, %8 : vector<8x128xf32>
    %10 = arith.addf %6, %9 : vector<8x128xf32>
    %c0_6 = arith.constant 0 : index
    %c0_7 = arith.constant 0 : index
    %11 = vector.load %arg6[%c0_6, %c0_7] : memref<8x128xf32, #tpu.memory_space<vmem>>, vector<8x128xf32>
    tpu.vector_store %arg6[%c0_6, %c0_7], %10 {strides = array<i32>} : memref<8x128xf32, #tpu.memory_space<vmem>>, vector<8x128xf32>,
    %c0_8 = arith.constant 0 : index
    %c0_9 = arith.constant 0 : index
    %12 = vector.load %arg7[%c0_8, %c0_9] : memref<8x128xf32, #tpu.memory_space<vmem>>, vector<8x128xf32>
    %13 = vector.extract_strided_slice %3 {offsets = [0, 0], sizes = [8, 128], strides = [1, 1]} : vector<8x256xf32> to vector<8x128xf32>
    %14 = vector.extract_strided_slice %3 {offsets = [0, 128], sizes = [8, 128], strides = [1, 1]} : vector<8x256xf32> to vector<8x128xf32>
    %15 = arith.addf %13, %14 : vector<8x128xf32>
    %16 = arith.addf %12, %15 : vector<8x128xf32>
    %c0_10 = arith.constant 0 : index
    %c0_11 = arith.constant 0 : index
    %17 = vector.load %arg7[%c0_10, %c0_11] : memref<8x128xf32, #tpu.memory_space<vmem>>, vector<8x128xf32>
    tpu.vector_store %arg7[%c0_10, %c0_11], %16 {strides = array<i32>} : memref<8x128xf32, #tpu.memory_space<vmem>>, vector<8x128xf32>,
    %c0_12 = arith.constant 0 : index
    %c0_13 = arith.constant 0 : index
    %18 = vector.load %arg8[%c0_12, %c0_13] : memref<8x128xf32, #tpu.memory_space<vmem>>, vector<8x128xf32>
    %19 = vector.extract_strided_slice %4 {offsets = [0, 0], sizes = [8, 128], strides = [1, 1]} : vector<8x256xf32> to vector<8x128xf32>
    %20 = vector.extract_strided_slice %4 {offsets = [0, 128], sizes = [8, 128], strides = [1, 1]} : vector<8x256xf32> to vector<8x128xf32>
    %21 = arith.addf %19, %20 : vector<8x128xf32>
    %22 = arith.addf %18, %21 : vector<8x128xf32>
    %c0_14 = arith.constant 0 : index
    %c0_15 = arith.constant 0 : index
    %23 = vector.load %arg8[%c0_14, %c0_15] : memref<8x128xf32, #tpu.memory_space<vmem>>, vector<8x128xf32>
    tpu.vector_store %arg8[%c0_14, %c0_15], %22 {strides = array<i32>} : memref<8x128xf32, #tpu.memory_space<vmem>>, vector<8x128xf32>,
    %c0_i32_16 = arith.constant 0 : i32
    %24 = arith.cmpi eq, %arg2, %c0_i32_16 : i32
    %25 = arith.extui %24 : i1 to i32
    %c0_i32_17 = arith.constant 0 : i32
    %26 = arith.cmpi ne, %25, %c0_i32_17 : i32
    scf.if %26 {
      %c0_18 = arith.constant 0 : index
      %c0_19 = arith.constant 0 : index
      %27 = vector.load %arg6[%c0_18, %c0_19] : memref<8x128xf32, #tpu.memory_space<vmem>>, vector<8x128xf32>
      %cst = arith.constant dense<0.000000e+00> : vector<8xf32>
      %28 = vector.multi_reduction <add>, %27, %cst [1] : vector<8x128xf32> to vector<8xf32>
      %29 = vector.shape_cast %28 : vector<8xf32> to vector<8x1xf32>
      %c0_20 = arith.constant 0 : index
      %c0_21 = arith.constant 0 : index
      %30 = vector.load %arg5[%c0_20, %c0_21] : memref<8x3xf32, #tpu.memory_space<vmem>>, vector<8x1xf32>
      tpu.vector_store %arg5[%c0_20, %c0_21], %29 {strides = array<i32>} : memref<8x3xf32, #tpu.memory_space<vmem>>, vector<8x1xf32>,
      %c0_22 = arith.constant 0 : index
      %c0_23 = arith.constant 0 : index
      %31 = vector.load %arg7[%c0_22, %c0_23] : memref<8x128xf32, #tpu.memory_space<vmem>>, vector<8x128xf32>
      %cst_24 = arith.constant dense<0.000000e+00> : vector<8xf32>
      %32 = vector.multi_reduction <add>, %31, %cst_24 [1] : vector<8x128xf32> to vector<8xf32>
      %33 = vector.shape_cast %32 : vector<8xf32> to vector<8x1xf32>
      %c0_25 = arith.constant 0 : index
      %c1 = arith.constant 1 : index
      %34 = vector.load %arg5[%c0_25, %c1] : memref<8x3xf32, #tpu.memory_space<vmem>>, vector<8x1xf32>
      tpu.vector_store %arg5[%c0_25, %c1], %33 {strides = array<i32>} : memref<8x3xf32, #tpu.memory_space<vmem>>, vector<8x1xf32>,
      %c0_26 = arith.constant 0 : index
      %c0_27 = arith.constant 0 : index
      %35 = vector.load %arg8[%c0_26, %c0_27] : memref<8x128xf32, #tpu.memory_space<vmem>>, vector<8x128xf32>
      %cst_28 = arith.constant dense<0.000000e+00> : vector<8xf32>
      %36 = vector.multi_reduction <add>, %35, %cst_28 [1] : vector<8x128xf32> to vector<8xf32>
      %37 = vector.shape_cast %36 : vector<8xf32> to vector<8x1xf32>
      %c0_29 = arith.constant 0 : index
      %c2 = arith.constant 2 : index
      %38 = vector.load %arg5[%c0_29, %c2] : memref<8x3xf32, #tpu.memory_space<vmem>>, vector<8x1xf32>
      tpu.vector_store %arg5[%c0_29, %c2], %37 {strides = array<i32>} : memref<8x3xf32, #tpu.memory_space<vmem>>, vector<8x1xf32>,
    } else {
    }
    return
  }
  func.func @transform_0(%arg0: i32, %arg1: i32, %arg2: i32) -> (i32, i32) {
    %c1_i32 = arith.constant 1 : i32
    %0 = arith.muli %arg1, %c1_i32 : i32
    %1 = arith.addi %0, %arg2 : i32
    %c0_i32 = arith.constant 0 : i32
    return %arg0, %1 : i32, i32
  }
  func.func @transform_1(%arg0: i32, %arg1: i32, %arg2: i32) -> (i32, i32) {
    %c1_i32 = arith.constant 1 : i32
    %0 = arith.muli %arg1, %c1_i32 : i32
    %1 = arith.addi %0, %arg2 : i32
    %c0_i32 = arith.constant 0 : i32
    return %arg0, %1 : i32, i32
  }
  func.func @transform_2(%arg0: i32, %arg1: i32, %arg2: i32) -> (i32, i32) {
    %c1_i32 = arith.constant 1 : i32
    %0 = arith.muli %arg1, %c1_i32 : i32
    %1 = arith.addi %0, %arg0 : i32
    %c0_i32 = arith.constant 0 : i32
    %c0_i32_0 = arith.constant 0 : i32
    return %1, %c0_i32 : i32, i32
  }
}

</mosaic_0001>

<bundles_post_ra>
// kernel: tpu_custom_call.1
= control target key start
LH: loop header
LB: loop body
LE: loop exit
PB: predicated region body
PF: predicated region fallthrough
CT: control target
= control target key end

     0   :  { %7 = vsyncpa [#allocation6], 0  ;;  %s204_s0 = inlined_call_operand.hbm [shape: f32[8,256], index: 0, kind: input, shape index: {}]   ;;  %s205_s1 = inlined_call_operand.hbm [shape: f32[8,256], index: 1, kind: input, shape index: {}]   ;;  %s206_s2 = inlined_call_operand.vmem [shape: f32[8,3], index: 2, kind: output, shape index: {}]  }
   0x1   :  { %8 = vsyncpa [#allocation8], 0  ;;  %s172_s9 = smov [#allocation5]   ;;  %s173_s11 = smov [#allocation7]  }
   0x2   :  { %s19_s10 = sshll.u32 %s172_s9, 4  ;;  %s33_s12 = sshll.u32 %s173_s11, 4  ;;  %s20_s10 = int_to_ptr.vmem [resolvable:$true] %s19_s10  ;;  %s34_s12 = int_to_ptr.vmem [resolvable:$true] %s33_s12 }
   0x3   :  { %s136_s13 = scalar_lea.vmem %s20_s10, 256  ;;  %p141_p1 = scmp.lt.s32.totalorder %s20_s10, %s20_s10 }
   0x4   :  { %p137_p0 = scmp.ne.s32.totalorder %s20_s10, %s136_s13  ;;  %p142_p2 = scmp.lt.s32.totalorder %s136_s13, %s136_s13 }
   0x6   :  { %p143_p3 = por %p142_p2, %p141_p1 }
   0x8   :  { %p144_p4 = pnand %p143_p3, %p137_p0 }
   0xa   :  { %147 = shalt.err (!%p144_p4)
}
   0xb   :  { %22 = dma.hbm_to_vmem [thread:$0]  %s204_s0, 256, %s20_s10, [#allocation6]  }
   0xc   :  { %s156_s16 = scalar_lea.vmem %s34_s12, 256  ;;  %p161_p6 = scmp.lt.s32.totalorder %s34_s12, %s34_s12 }
   0xd   :  { %p157_p5 = scmp.ne.s32.totalorder %s34_s12, %s156_s16  ;;  %p162_p7 = scmp.lt.s32.totalorder %s156_s16, %s156_s16 }
   0xf   :  { %p163_p8 = por %p162_p7, %p161_p6 }
  0x11   :  { %p164_p9 = pnand %p163_p8, %p157_p5 }
  0x13   :  { %167 = shalt.err (!%p164_p9)
}
  0x14   :  { %36 = dma.hbm_to_vmem [thread:$0]  %s205_s1, 256, %s34_s12, [#allocation8]  }
  0x15   :  { %168 = dma.done.wait [#allocation6], 256  }
  0x16   :  { %169 = vsyncadd [#allocation6], 4294967040 }
  0x17   :  { %170 = dma.done.wait [#allocation8], 256  }
  0x18   :  { %171 = vsyncadd [#allocation8], 4294967040  ;;  %v65_v0 = vld [vmem:[#allocation5] sm:$0xff]  ;;  %v66_v1 = vld [vmem:[#allocation5 + $0x8] sm:$0xff]  ;;  %vm89_vm0 = vcmask 7168   ;;  %vm94_vm1 = vcmask 15368  }
  0x19   :  { %v67_v2 = vld [vmem:[#allocation7] sm:$0xff]  ;;  %v68_v3 = vld [vmem:[#allocation7 + $0x8] sm:$0xff]  ;;  %v76_v8 = vadd.f32 %v66_v1, %v65_v0  ;;  %vm99_vm2 = vcmask 23568  }
  0x1a   :  { %v69_v4 = vmul.f32 %v67_v2, %v65_v0  ;;  %v70_v5 = vmul.f32 %v68_v3, %v66_v1  ;;  %v80_v6 = vadd.f32 %v68_v3, %v67_v2 }
  0x1c   :  { %v72_v7 = vadd.f32 %v70_v5, %v69_v4  ;;  %97 = vadd.xlane.f32.xlu1 %v80_v6 }
  0x1e   :  { %87 = vadd.xlane.f32.xlu0 %v72_v7 }
  0x22   :  { %92 = vadd.xlane.f32.xlu0 %v76_v8 }
  0xa5   :  { %v98_v10 = vpop.xlane.xlu1 %97 }
  0xa7   :  { %v88_v9 = vpop.xlane.xlu0 %87 }
  0xa8   :  { %90 = vst.msk [vmem:[%s206_s2] sm:$0xff] %vm89_vm0, %v88_v9 }
  0xab   :  { %v93_v11 = vpop.xlane.xlu0 %92 }
  0xac   :  { %95 = vst.msk [vmem:[%s206_s2] sm:$0xff] %vm94_vm1, %v93_v11 }
  0xad   :  { %100 = vst.msk [vmem:[%s206_s2] sm:$0xff] %vm99_vm2, %v98_v10 }
  0xae   :  { %116 = vsyncpa [#allocation6], 1 }
  0xaf   :  { %117 = vsyncpa [#allocation8], 1 }

</bundles_post_ra>
